<compile_context>
chip_gen: v7x
topology: tpu7x:2x2x1
jax: 0.10.0
libtpu: 0.0.40
codegen_flags: <defaults>
</compile_context>

<pallas_src>
import jax
import jax.numpy as jnp
from jax.experimental import pallas as pl
from jax.experimental.pallas import tpu as pltpu


def _round_up(n, m):
    return ((n + m - 1) // m) * m


def _pick_tile_b(batch, tile_b_max):
    """Batch tile: multiple of 8 (sublane), never larger than the (rounded) batch,
    and capped at round_up(cdiv(B, 2), 256) so batches > 256 rows give >= 2 grid
    steps (both v7x TensorCores engage via the "parallel" batch axis)."""
    tile_b_max = _round_up(max(int(tile_b_max), 8), 8)
    per_core = _round_up(pl.cdiv(batch, 2), 256)
    return max(8, min(tile_b_max, per_core, _round_up(batch, 8)))


def _dqn_mlp_kernel(x_ref, w1_ref, b1_ref, w2_ref, b2_ref, w3_ref, b3_ref, o_ref):
    # Layer 1: Linear (bf16 MXU inputs, f32 accumulation) + bias + ReLU in f32.
    # Dropout(0.2) == identity in eval mode.
    x = x_ref[...].astype(w1_ref.dtype)   # f32 -> bf16 cast on the VPU (large slack)
    h1 = jnp.dot(x, w1_ref[...], preferred_element_type=jnp.float32)
    h1 = jnp.maximum(h1 + b1_ref[...], 0.0)

    # Layer 2: Linear + bias + ReLU (Dropout = identity in eval).
    h2 = jnp.dot(h1.astype(w2_ref.dtype), w2_ref[...],
                 preferred_element_type=jnp.float32)
    h2 = jnp.maximum(h2 + b2_ref[...], 0.0)

    # Output head: Linear (no activation). Padded output columns are all-zero.
    out = jnp.dot(h2.astype(w3_ref.dtype), w3_ref[...],
                  preferred_element_type=jnp.float32)
    o_ref[...] = (out + b3_ref[...]).astype(o_ref.dtype)


def prepare_params(params, *, compute_dtype=jnp.bfloat16):
    """One-time weight prep (bf16 cast + action_dim lane-pad to 128), hoisted out of
    the per-call forward path.  Biases stay f32 (the epilogue runs in f32)."""
    f32 = jnp.float32
    h2_dim = params["w2"].shape[1]
    action_dim = int(params["w3"].shape[1])
    act_pad = _round_up(action_dim, 128)

    w1 = params["w1"].astype(compute_dtype)
    w2 = params["w2"].astype(compute_dtype)
    w3 = jnp.zeros((h2_dim, act_pad), compute_dtype).at[:, :action_dim].set(
        params["w3"].astype(compute_dtype))
    b1 = params["b1"].reshape(1, -1).astype(f32)
    b2 = params["b2"].reshape(1, -1).astype(f32)
    b3 = jnp.zeros((1, act_pad), f32).at[:, :action_dim].set(
        params["b3"].reshape(1, -1).astype(f32))
    return dict(w1=w1, b1=b1, w2=w2, b2=b2, w3=w3, b3=b3, action_dim=action_dim)


def dqn_forward(x, prepped, *, tile_b=2048, out_dtype=jnp.bfloat16):
    """DQN MLP forward pass as one fused, batch-tiled Pallas kernel.

    x:        (B, obs_dim) float32 observations.
    prepped:  output of prepare_params() (bf16 weights, f32 biases, padded head).
    returns:  (B, action_dim) Q-values in `out_dtype` (bf16 default; f32 optional).
    """
    B, obs_dim = x.shape
    w1, b1 = prepped["w1"], prepped["b1"]
    w2, b2 = prepped["w2"], prepped["b2"]
    w3, b3 = prepped["w3"], prepped["b3"]
    action_dim = prepped["action_dim"]
    assert w1.shape[0] == obs_dim, (w1.shape, obs_dim)
    h1_dim, h2_dim, act_pad = w1.shape[1], w2.shape[1], w3.shape[1]

    tb = _pick_tile_b(B, tile_b)
    grid = (pl.cdiv(B, tb),)

    flops = 2 * B * (obs_dim * h1_dim + h1_dim * h2_dim + h2_dim * act_pad)
    bytes_accessed = (
        B * obs_dim * x.dtype.itemsize                                  # x (f32, read once)
        + (obs_dim * h1_dim + h1_dim * h2_dim + h2_dim * act_pad) * 2   # bf16 weights
        + (h1_dim + h2_dim + act_pad) * 4                               # f32 biases
        + B * act_pad * jnp.dtype(out_dtype).itemsize                   # output writeback
    )

    # Weights/biases: constant block index -> DMA'd once, VMEM-resident across
    # all batch tiles (never re-fetched).
    resident = lambda a: pl.BlockSpec(a.shape, lambda i: (0, 0))

    out_padded = pl.pallas_call(
        _dqn_mlp_kernel,
        out_shape=jax.ShapeDtypeStruct((B, act_pad), out_dtype),
        grid=grid,
        in_specs=[
            # x batch-tiled; last dim == full obs_dim (no 128 padding needed).
            pl.BlockSpec((tb, obs_dim), lambda i: (i, 0)),
            resident(w1), resident(b1),
            resident(w2), resident(b2),
            resident(w3), resident(b3),
        ],
        # Lane-dense (multiple-of-128) unmasked output store; the trailing partial
        # batch block (if any) is masked by Pallas, so no batch padding is needed.
        out_specs=pl.BlockSpec((tb, act_pad), lambda i: (i, 0)),
        compiler_params=pltpu.CompilerParams(
            dimension_semantics=("parallel",),
            vmem_limit_bytes=32 * 1024 * 1024,  # headroom for tile_b up to ~4096; safe on v5e/v6e/v7x
        ),
        cost_estimate=pl.CostEstimate(
            flops=flops, transcendentals=0, bytes_accessed=bytes_accessed),
    )(x, w1, b1, w2, b2, w3, b3)

    # Padded (all-zero) action columns sliced off here; consumers that can take
    # the lane-padded layout directly should skip this slice.
    return out_padded[:, :action_dim]


def init_params(key, obs_dim, action_dim, hidden_dims=(256, 128)):
    """Deterministic synthetic parameter init (shapes match nn.Linear layers)."""
    dims = [obs_dim, *hidden_dims, action_dim]
    params = {}
    for i, (d_in, d_out) in enumerate(zip(dims[:-1], dims[1:]), start=1):
        key, kw, kb = jax.random.split(key, 3)
        scale = 1.0 / jnp.sqrt(d_in)
        params[f"w{i}"] = jax.random.uniform(
            kw, (d_in, d_out), jnp.float32, minval=-scale, maxval=scale)
        params[f"b{i}"] = jax.random.uniform(
            kb, (1, d_out), jnp.float32, minval=-scale, maxval=scale)
    return params


if __name__ == "__main__":
    key = jax.random.PRNGKey(0)
    B, obs_dim, action_dim = 8, 64, 32

    k_x, k_p = jax.random.split(key)
    x = jax.random.normal(k_x, (B, obs_dim), dtype=jnp.float32)
    params = init_params(k_p, obs_dim, action_dim)
    prepped = prepare_params(params)   # one-time weight cast/pad, off the forward path

    q_values = dqn_forward(x, prepped)
    jax.block_until_ready(q_values)
    assert q_values.shape == (B, action_dim)

    # Reference in plain JAX, quantizing matmul inputs to bf16 exactly like the kernel
    # (f32 accumulation, f32 bias/ReLU epilogue), then rounding the output to bf16 like
    # the kernel's store, so the comparison is apples-to-apples.
    bf = lambda a: a.astype(jnp.bfloat16).astype(jnp.float32)
    h = jnp.maximum(bf(x) @ bf(params["w1"]) + params["b1"], 0.0)
    h = jnp.maximum(bf(h) @ bf(params["w2"]) + params["b2"], 0.0)
    ref = (bf(h) @ bf(params["w3"]) + params["b3"]).astype(jnp.bfloat16).astype(jnp.float32)

    got = q_values.astype(jnp.float32)
    assert jnp.allclose(got, ref, atol=3e-2, rtol=3e-2), (
        float(jnp.max(jnp.abs(got - ref))))

    print("KERNEL_OK")
</pallas_src>

<mosaic_0001>
module attributes {stable_mosaic.version = 11 : i64} {
  func.func @_dqn_mlp_kernel(%arg0: i32, %arg1: memref<8x64xf32, #tpu.memory_space<vmem>>, %arg2: memref<64x256xbf16, #tpu.memory_space<vmem>>, %arg3: memref<1x256xf32, #tpu.memory_space<vmem>>, %arg4: memref<256x128xbf16, #tpu.memory_space<vmem>>, %arg5: memref<1x128xf32, #tpu.memory_space<vmem>>, %arg6: memref<128x128xbf16, #tpu.memory_space<vmem>>, %arg7: memref<1x128xf32, #tpu.memory_space<vmem>>, %arg8: memref<8x128xbf16, #tpu.memory_space<vmem>>) attributes {dimension_semantics = [#tpu.dimension_semantics<parallel>], iteration_bounds = array<i64: 1>, scalar_prefetch = 0 : i64, scratch_operands = 0 : i64, tpu.core_type = #tpu.core_type<tc>, window_params = [{transform_indices = @transform_0, window_bounds = array<i64: 8, 64>}, {pipeline_mode = #tpu.pipeline_mode<synchronous>, transform_indices = @transform_1, window_bounds = array<i64: 64, 256>}, {pipeline_mode = #tpu.pipeline_mode<synchronous>, transform_indices = @transform_2, window_bounds = array<i64: 1, 256>}, {pipeline_mode = #tpu.pipeline_mode<synchronous>, transform_indices = @transform_3, window_bounds = array<i64: 256, 128>}, {pipeline_mode = #tpu.pipeline_mode<synchronous>, transform_indices = @transform_4, window_bounds = array<i64: 1, 128>}, {pipeline_mode = #tpu.pipeline_mode<synchronous>, transform_indices = @transform_5, window_bounds = array<i64: 128, 128>}, {pipeline_mode = #tpu.pipeline_mode<synchronous>, transform_indices = @transform_6, window_bounds = array<i64: 1, 128>}, {transform_indices = @transform_7, window_bounds = array<i64: 8, 128>}]} {
    %c0 = arith.constant 0 : index
    %c0_0 = arith.constant 0 : index
    %0 = vector.load %arg1[%c0, %c0_0] : memref<8x64xf32, #tpu.memory_space<vmem>>, vector<8x64xf32>
    %1 = arith.truncf %0 : vector<8x64xf32> to vector<8x64xbf16>
    %c0_1 = arith.constant 0 : index
    %c0_2 = arith.constant 0 : index
    %2 = vector.load %arg2[%c0_1, %c0_2] : memref<64x256xbf16, #tpu.memory_space<vmem>>, vector<64x256xbf16>
    %cst = arith.constant dense<0.000000e+00> : vector<8x256xf32>
    %3 = tpu.matmul %1, %2, %cst {dimension_numbers = #tpu.dot_dimension_numbers<[1], [0], [0], [1], [0, 0, 1, 1], [], []>} : vector<8x64xbf16>, vector<64x256xbf16>, vector<8x256xf32> -> vector<8x256xf32>
    %c0_3 = arith.constant 0 : index
    %c0_4 = arith.constant 0 : index
    %4 = vector.load %arg3[%c0_3, %c0_4] : memref<1x256xf32, #tpu.memory_space<vmem>>, vector<1x256xf32>
    %5 = vector.broadcast %4 : vector<1x256xf32> to vector<8x256xf32>
    %6 = arith.addf %3, %5 : vector<8x256xf32>
    %cst_5 = arith.constant 0.000000e+00 : f32
    %7 = vector.broadcast %cst_5 : f32 to vector<8x256xf32>
    %8 = arith.maximumf %6, %7 : vector<8x256xf32>
    %9 = arith.truncf %8 : vector<8x256xf32> to vector<8x256xbf16>
    %c0_6 = arith.constant 0 : index
    %c0_7 = arith.constant 0 : index
    %10 = vector.load %arg4[%c0_6, %c0_7] : memref<256x128xbf16, #tpu.memory_space<vmem>>, vector<256x128xbf16>
    %cst_8 = arith.constant dense<0.000000e+00> : vector<8x128xf32>
    %11 = tpu.matmul %9, %10, %cst_8 {dimension_numbers = #tpu.dot_dimension_numbers<[1], [0], [0], [1], [0, 0, 1, 1], [], []>} : vector<8x256xbf16>, vector<256x128xbf16>, vector<8x128xf32> -> vector<8x128xf32>
    %c0_9 = arith.constant 0 : index
    %c0_10 = arith.constant 0 : index
    %12 = vector.load %arg5[%c0_9, %c0_10] : memref<1x128xf32, #tpu.memory_space<vmem>>, vector<1x128xf32>
    %13 = vector.broadcast %12 : vector<1x128xf32> to vector<8x128xf32>
    %14 = arith.addf %11, %13 : vector<8x128xf32>
    %cst_11 = arith.constant 0.000000e+00 : f32
    %15 = vector.broadcast %cst_11 : f32 to vector<8x128xf32>
    %16 = arith.maximumf %14, %15 : vector<8x128xf32>
    %17 = arith.truncf %16 : vector<8x128xf32> to vector<8x128xbf16>
    %c0_12 = arith.constant 0 : index
    %c0_13 = arith.constant 0 : index
    %18 = vector.load %arg6[%c0_12, %c0_13] : memref<128x128xbf16, #tpu.memory_space<vmem>>, vector<128x128xbf16>
    %cst_14 = arith.constant dense<0.000000e+00> : vector<8x128xf32>
    %19 = tpu.matmul %17, %18, %cst_14 {dimension_numbers = #tpu.dot_dimension_numbers<[1], [0], [0], [1], [0, 0, 1, 1], [], []>} : vector<8x128xbf16>, vector<128x128xbf16>, vector<8x128xf32> -> vector<8x128xf32>
    %c0_15 = arith.constant 0 : index
    %c0_16 = arith.constant 0 : index
    %20 = vector.load %arg7[%c0_15, %c0_16] : memref<1x128xf32, #tpu.memory_space<vmem>>, vector<1x128xf32>
    %21 = vector.broadcast %20 : vector<1x128xf32> to vector<8x128xf32>
    %22 = arith.addf %19, %21 : vector<8x128xf32>
    %23 = arith.truncf %22 : vector<8x128xf32> to vector<8x128xbf16>
    %c0_17 = arith.constant 0 : index
    %c0_18 = arith.constant 0 : index
    %24 = vector.load %arg8[%c0_17, %c0_18] : memref<8x128xbf16, #tpu.memory_space<vmem>>, vector<8x128xbf16>
    tpu.vector_store %arg8[%c0_17, %c0_18], %23 {strides = array<i32>} : memref<8x128xbf16, #tpu.memory_space<vmem>>, vector<8x128xbf16>,
    return
  }
  func.func @transform_0(%arg0: i32) -> (i32, i32) {
    %c0_i32 = arith.constant 0 : i32
    %c0_i32_0 = arith.constant 0 : i32
    return %arg0, %c0_i32 : i32, i32
  }
  func.func @transform_1(%arg0: i32) -> (i32, i32) {
    %c0_i32 = arith.constant 0 : i32
    %c0_i32_0 = arith.constant 0 : i32
    %c0_i32_1 = arith.constant 0 : i32
    return %c0_i32, %c0_i32_0 : i32, i32
  }
  func.func @transform_2(%arg0: i32) -> (i32, i32) {
    %c0_i32 = arith.constant 0 : i32
    %c0_i32_0 = arith.constant 0 : i32
    %c0_i32_1 = arith.constant 0 : i32
    return %c0_i32, %c0_i32_0 : i32, i32
  }
  func.func @transform_3(%arg0: i32) -> (i32, i32) {
    %c0_i32 = arith.constant 0 : i32
    %c0_i32_0 = arith.constant 0 : i32
    %c0_i32_1 = arith.constant 0 : i32
    return %c0_i32, %c0_i32_0 : i32, i32
  }
  func.func @transform_4(%arg0: i32) -> (i32, i32) {
    %c0_i32 = arith.constant 0 : i32
    %c0_i32_0 = arith.constant 0 : i32
    %c0_i32_1 = arith.constant 0 : i32
    return %c0_i32, %c0_i32_0 : i32, i32
  }
  func.func @transform_5(%arg0: i32) -> (i32, i32) {
    %c0_i32 = arith.constant 0 : i32
    %c0_i32_0 = arith.constant 0 : i32
    %c0_i32_1 = arith.constant 0 : i32
    return %c0_i32, %c0_i32_0 : i32, i32
  }
  func.func @transform_6(%arg0: i32) -> (i32, i32) {
    %c0_i32 = arith.constant 0 : i32
    %c0_i32_0 = arith.constant 0 : i32
    %c0_i32_1 = arith.constant 0 : i32
    return %c0_i32, %c0_i32_0 : i32, i32
  }
  func.func @transform_7(%arg0: i32) -> (i32, i32) {
    %c0_i32 = arith.constant 0 : i32
    %c0_i32_0 = arith.constant 0 : i32
    return %arg0, %c0_i32 : i32, i32
  }
}

</mosaic_0001>

<bundles_post_ra>
// kernel: tpu_custom_call.1
= control target key start
LH: loop header
LB: loop body
LE: loop exit
PB: predicated region body
PF: predicated region fallthrough
CT: control target
= control target key end

     0   :  { %12 = vsyncpa [#allocation3], 0  ;;  %s872_s0 = inlined_call_operand.hbm [shape: f32[8,64], index: 0, kind: input, shape index: {}]   ;;  %s873_s1 = inlined_call_operand.hbm [shape: bf16[64,256], index: 1, kind: input, shape index: {}]   ;;  %s874_s2 = inlined_call_operand.vmem [shape: f32[1,256], index: 2, kind: input, shape index: {}]   ;;  %s875_s3 = inlined_call_operand.hbm [shape: bf16[256,128], index: 3, kind: input, shape index: {}]   ;;  %s876_s4 = inlined_call_operand.vmem [shape: f32[1,128], index: 4, kind: input, shape index: {}]   ;;  %s877_s5 = inlined_call_operand.hbm [shape: bf16[128,128], index: 5, kind: input, shape index: {}]   ;;  %s878_s6 = inlined_call_operand.vmem [shape: f32[1,128], index: 6, kind: input, shape index: {}]   ;;  %s879_s7 = inlined_call_operand.hbm [shape: bf16[8,128], index: 7, kind: output, shape index: {}]  }
   0x1   :  { %13 = vsyncpa [#allocation6], 0 }
   0x2   :  { %14 = vsyncpa [#allocation9], 0 }
   0x3   :  { %15 = vsyncpa [#allocation4], 0  ;;  %s751_s24 = smov [#allocation5]   ;;  %s633_s28 = scalar_lea.hbm %s873_s1, 1024 }
   0x4   :  { %s31_s25 = sshll.u32 %s751_s24, 4  ;;  %p634_p0 = scmp.ne.s32.totalorder %s873_s1, %s633_s28  ;;  %s32_s25 = int_to_ptr.vmem [resolvable:$true] %s31_s25 }
   0x5   :  { %p637_p1 = scmp.lt.u32.totalorder %s633_s28, %s873_s1 }
   0x7   :  { %p639_p2 = pnand %p637_p1, %p634_p0 }
   0x9   :  { %642 = shalt.err (!%p639_p2)
}
   0xa   :  { %s643_s10 = scalar_lea.vmem %s32_s25, 1024  ;;  %p648_p4 = scmp.lt.s32.totalorder %s32_s25, %s32_s25 }
   0xb   :  { %p644_p3 = scmp.ne.s32.totalorder %s32_s25, %s643_s10  ;;  %p649_p5 = scmp.lt.s32.totalorder %s643_s10, %s643_s10 }
   0xd   :  { %p650_p6 = por %p649_p5, %p648_p4 }
   0xf   :  { %p651_p7 = pnand %p650_p6, %p644_p3 }
  0x11   :  { %654 = shalt.err (!%p651_p7)
}
  0x12   :  { %s752_s11 = smov 128   ;;  %s753_s12 = smov 8  }
  0x13   :  { %37 = dma.hbm_to_vmem [thread:$0]  %s873_s1, 1024, %s32_s25, [#allocation6], %s752_s11, %s752_s11, %s753_s12  }
  0x14   :  { %s754_s15 = smov [#allocation2]   ;;  %s755_s17 = smov [#allocation7]  }
  0x15   :  { %s22_s16 = sshll.u32 %s754_s15, 4  ;;  %s45_s18 = sshll.u32 %s755_s17, 4  ;;  %s23_s16 = int_to_ptr.vmem [resolvable:$true] %s22_s16  ;;  %s46_s18 = int_to_ptr.vmem [resolvable:$true] %s45_s18 }
  0x16   :  { %s655_s21 = scalar_lea.hbm %s872_s0, 128 }
  0x17   :  { %p656_p8 = scmp.ne.s32.totalorder %s872_s0, %s655_s21  ;;  %p659_p9 = scmp.lt.u32.totalorder %s655_s21, %s872_s0 }
  0x19   :  { %p661_p10 = pnand %p659_p9, %p656_p8 }
  0x1b   :  { %664 = shalt.err (!%p661_p10)
}
  0x1c   :  { %s665_s1 = scalar_lea.vmem %s23_s16, 128  ;;  %p670_p12 = scmp.lt.s32.totalorder %s23_s16, %s23_s16 }
  0x1d   :  { %p666_p11 = scmp.ne.s32.totalorder %s23_s16, %s665_s1  ;;  %p671_p13 = scmp.lt.s32.totalorder %s665_s1, %s665_s1 }
  0x1f   :  { %p672_p0 = por %p671_p13, %p670_p12 }
  0x21   :  { %p673_p1 = pnand %p672_p0, %p666_p11 }
  0x23   :  { %676 = shalt.err (!%p673_p1)
}
  0x24   :  { %25 = dma.hbm_to_vmem [thread:$0]  %s872_s0, 128, %s23_s16, [#allocation3]  }
  0x25   :  { %s677_s30 = scalar_lea.hbm %s875_s3, 2048 }
  0x26   :  { %p678_p2 = scmp.ne.s32.totalorder %s875_s3, %s677_s30  ;;  %p681_p3 = scmp.lt.u32.totalorder %s677_s30, %s875_s3 }
  0x28   :  { %p683_p4 = pnand %p681_p3, %p678_p2 }
  0x2a   :  { %686 = shalt.err (!%p683_p4)
}
  0x2b   :  { %s687_s12 = scalar_lea.vmem %s46_s18, 2048  ;;  %p692_p6 = scmp.lt.s32.totalorder %s46_s18, %s46_s18 }
  0x2c   :  { %p688_p5 = scmp.ne.s32.totalorder %s46_s18, %s687_s12  ;;  %p693_p7 = scmp.lt.s32.totalorder %s687_s12, %s687_s12 }
  0x2e   :  { %p694_p8 = por %p693_p7, %p692_p6 }
  0x30   :  { %p695_p9 = pnand %p694_p8, %p688_p5 }
  0x32   :  { %698 = shalt.err (!%p695_p9)
}
  0x33   :  { %s756_s0 = smov 64   ;;  %s757_s13 = smov 4  }
  0x34   :  { %51 = dma.hbm_to_vmem [thread:$0]  %s875_s3, 2048, %s46_s18, [#allocation6], %s756_s0, %s756_s0, %s757_s13  }
  0x35   :  { %s758_s16 = smov [#allocation8]   ;;  %s699_s21 = scalar_lea.hbm %s877_s5, 1024 }
  0x36   :  { %s59_s17 = sshll.u32 %s758_s16, 4  ;;  %p700_p10 = scmp.ne.s32.totalorder %s877_s5, %s699_s21  ;;  %s60_s17 = int_to_ptr.vmem [resolvable:$true] %s59_s17 }
  0x37   :  { %p703_p11 = scmp.lt.u32.totalorder %s699_s21, %s877_s5 }
  0x39   :  { %p705_p12 = pnand %p703_p11, %p700_p10 }
  0x3b   :  { %708 = shalt.err (!%p705_p12)
}
  0x3c   :  { %s709_s1 = scalar_lea.vmem %s60_s17, 1024  ;;  %p714_p0 = scmp.lt.s32.totalorder %s60_s17, %s60_s17 }
  0x3d   :  { %p710_p13 = scmp.ne.s32.totalorder %s60_s17, %s709_s1  ;;  %p715_p1 = scmp.lt.s32.totalorder %s709_s1, %s709_s1 }
  0x3f   :  { %p716_p2 = por %p715_p1, %p714_p0 }
  0x41   :  { %p717_p3 = pnand %p716_p2, %p710_p13 }
  0x43   :  { %720 = shalt.err (!%p717_p3)
}
  0x44   :  { %65 = dma.hbm_to_vmem [thread:$0]  %s877_s5, 1024, %s60_s17, [#allocation9], %s756_s0, %s756_s0, %s757_s13  }
  0x45   :  { %743 = dma.done.wait [#allocation3], 128  }
  0x46   :  { %744 = vsyncadd [#allocation3], 4294967168 }
  0x47   :  { %745 = dma.done.wait [#allocation6], 3072  }
  0x48   :  { %746 = vsyncadd [#allocation6], 4294964224 }
  0x49   :  { %747 = dma.done.wait [#allocation9], 1024  }
  0x4a   :  { %748 = vsyncadd [#allocation9], 4294966272  ;;  %v759_v0 = vmov 0   ;;  %v597_v1 = vld [vmem:[#allocation5 + $0x4] ss:$8 sps:$4 sm:$0xff]   ;;  %v613_v13 = vld [vmem:[#allocation7 + $0x50] sm:$0xff]   ;;  %v93_v34 = vlaneseq }
  0x4b   :  { %179 = vmatprep.mubr.bf16.mxu0 %v759_v0  ;;  %v599_v2 = vld [vmem:[#allocation5] ss:$8 sps:$4 sm:$0xff]   ;;  %147 = vmatprep.subr.bf16.mxu0 %v597_v1  ;;  %v600_v3 = vld [vmem:[#allocation5 + $0x14] ss:$8 sps:$4 sm:$0xff]   ;;  %v602_v4 = vld [vmem:[#allocation5 + $0x10] ss:$8 sps:$4 sm:$0xff]  }
  0x4c   :  { %148 = vmatpush1.bf16.msra.mxu0 %v599_v2  ;;  %v603_v5 = vld [vmem:[#allocation5 + $0x24] ss:$8 sps:$4 sm:$0xff]   ;;  %v605_v6 = vld [vmem:[#allocation5 + $0x20] ss:$8 sps:$4 sm:$0xff]   ;;  %v606_v7 = vld [vmem:[#allocation5 + $0x34] ss:$8 sps:$4 sm:$0xff]  }
  0x4d   :  { %149 = vmatprep.subr.bf16.mxu0 %v600_v3  ;;  %v609_v8 = vld [vmem:[#allocation7 + $0x40] sm:$0xff]   ;;  %v611_v10 = vld [vmem:[#allocation7 + $0x48] sm:$0xff]   ;;  %v608_v11 = vld [vmem:[#allocation5 + $0x30] ss:$8 sps:$4 sm:$0xff]   ;;  %vm143_vm0 = vcmask 523264   ;;  %v760_v28 = vmov 0.0  }
  0x4e   :  { %v610_v9 = vld [vmem:[#allocation7] sm:$0xff]   ;;  %534 = vmatprep.subr.bf16.mxu1 %v609_v8  ;;  %v612_v12 = vld [vmem:[#allocation7 + $0x8] sm:$0xff]   ;;  %v81_v14 = vld [vmem:[#allocation2] sm:$0xff]  ;;  %v94_v35 = vshrl.u32 %v93_v34, 7  ;;  %vm761_vm1 = vmmov 0   ;;  %s762_s30 = smov [#allocation10]  }
  0x4f   :  { %535 = vmatpush3.bf16.msra.mxu1 %v610_v9  ;;  %v614_v15 = vld [vmem:[#allocation7 + $0x10] sm:$0xff]   ;;  %v82_v16 = vpack.c.bf16 %v81_v14, %v81_v14  ;;  %v615_v17 = vld [vmem:[#allocation7 + $0x58] sm:$0xff]   ;;  %v617_v19 = vld [vmem:[#allocation7 + $0x60] sm:$0xff]   ;;  %s488_s8 = sshll.u32 %s762_s30, 4  ;;  %s489_s8 = int_to_ptr.vmem [resolvable:$true] %s488_s8 }
  0x50   :  { %150 = vmatpush1.bf16.msra.mxu0 %v602_v4  ;;  %536 = vmatprep.subr.bf16.mxu1 %v611_v10  ;;  %v616_v18 = vld [vmem:[#allocation7 + $0x18] sm:$0xff]   ;;  %v618_v20 = vld [vmem:[#allocation7 + $0x20] sm:$0xff]   ;;  %v619_v21 = vld [vmem:[#allocation7 + $0x68] sm:$0xff]   ;;  %v95_v36 = vsub.s32 0, %v94_v35  ;;  %v99_v38 = vsub.s32 1, %v94_v35  ;;  %p726_p5 = scmp.lt.s32.totalorder %s489_s8, %s489_s8 }
  0x51   :  { %151 = vmatprep.subr.bf16.mxu0 %v603_v5  ;;  %v620_v22 = vld [vmem:[#allocation7 + $0x28] sm:$0xff]   ;;  %v621_v23 = vld [vmem:[#allocation7 + $0x70] sm:$0xff]   ;;  %v623_v25 = vld [vmem:[#allocation7 + $0x78] sm:$0xff]  }
  0x52   :  { %v622_v24 = vld [vmem:[#allocation7 + $0x30] sm:$0xff]   ;;  %v624_v26 = vld [vmem:[#allocation7 + $0x38] sm:$0xff]   ;;  %v625_v27 = vld [vmem:[#allocation8] sm:$0xff]  }
  0x53   :  { %537 = vmatpush3.bf16.msra.mxu1 %v612_v12  ;;  %v626_v29 = vld [vmem:[#allocation8 + $0x8] sm:$0xff]   ;;  %v627_v30 = vld [vmem:[#allocation8 + $0x10] sm:$0xff]   ;;  %v628_v31 = vld [vmem:[#allocation8 + $0x18] sm:$0xff]  }
  0x54   :  { %152 = vmatpush1.bf16.msra.mxu0 %v605_v6  ;;  %538 = vmatprep.subr.bf16.mxu1 %v613_v13  ;;  %v629_v32 = vld [vmem:[#allocation8 + $0x20] sm:$0xff]   ;;  %v630_v33 = vld [vmem:[#allocation8 + $0x28] sm:$0xff]   ;;  %v91_v37 = vld [vmem:[%s874_s2] sm:$0x3] }
  0x55   :  { %153 = vmatprep.subr.bf16.mxu0 %v606_v7  ;;  %v96_v39 = vrot.slane %v91_v37, %v95_v36  ;;  %v100_v40 = vrot.slane %v91_v37, %v99_v38  ;;  %v631_v51 = vld [vmem:[#allocation8 + $0x30] sm:$0xff]   ;;  %v632_v52 = vld [vmem:[#allocation8 + $0x38] sm:$0xff]  }
  0x56   :  { %v508_v54 = vld [vmem:[%s876_s4] ss:$0 sm:$0xff]  ;;  %s721_s4 = scalar_lea.vmem %s489_s8, 64 }
  0x57   :  { %539 = vmatpush3.bf16.msra.mxu1 %v614_v15  ;;  %v525_v62 = vld [vmem:[%s878_s6] ss:$0 sm:$0xff]  ;;  %p722_p4 = scmp.ne.s32.totalorder %s489_s8, %s721_s4  ;;  %p727_p6 = scmp.lt.s32.totalorder %s721_s4, %s721_s4 }
  0x58   :  { %154 = vmatpush1.bf16.msra.mxu0 %v608_v11  ;;  %540 = vmatprep.subr.bf16.mxu1 %v615_v17 }
  0x59   :  { %565 = vmatprep.subr.bf16.mxu0 %v760_v28  ;;  %p728_p7 = por %p727_p6, %p726_p5 }
  0x5b   :  { %507 = vmatmul.mubr.msk.bf16.vlgmr.msra.gmra.mrb[0].mxu0 %vm143_vm0, %v82_v16  ;;  %541 = vmatpush3.bf16.msra.mxu1 %v616_v18  ;;  %p729_p8 = pnand %p728_p7, %p722_p4 }
  0x5c   :  { %542 = vmatprep.subr.bf16.mxu1 %v617_v19  ;;  %566 = vmatpush3.bf16.msra.mxu0 %v625_v27 }
  0x5d   :  { %567 = vmatprep.subr.bf16.mxu0 %v760_v28  ;;  %581 = vmatprep.mubr.msk.bf16.mxu0 %vm761_vm1, %v760_v28 }
  0x5f   :  { %543 = vmatpush3.bf16.msra.mxu1 %v618_v20 }
  0x60   :  { %544 = vmatprep.subr.bf16.mxu1 %v619_v21  ;;  %568 = vmatpush3.bf16.msra.mxu0 %v626_v29 }
  0x61   :  { %569 = vmatprep.subr.bf16.mxu0 %v760_v28 }
  0x63   :  { %545 = vmatpush3.bf16.msra.mxu1 %v620_v22 }
  0x64   :  { %546 = vmatprep.subr.bf16.mxu1 %v621_v23  ;;  %570 = vmatpush3.bf16.msra.mxu0 %v627_v30 }
  0x65   :  { %571 = vmatprep.subr.bf16.mxu0 %v760_v28 }
  0x67   :  { %547 = vmatpush3.bf16.msra.mxu1 %v622_v24 }
  0x68   :  { %548 = vmatprep.subr.bf16.mxu1 %v623_v25  ;;  %572 = vmatpush3.bf16.msra.mxu0 %v628_v31 }
  0x69   :  { %573 = vmatprep.subr.bf16.mxu0 %v760_v28 }
  0x6b   :  { %549 = vmatpush3.bf16.msra.mxu1 %v624_v26 }
  0x6c   :  { %574 = vmatpush3.bf16.msra.mxu0 %v629_v32 }
  0x6d   :  { %575 = vmatprep.subr.bf16.mxu0 %v760_v28 }
  0x70   :  { %576 = vmatpush3.bf16.msra.mxu0 %v630_v33 }
  0x71   :  { %577 = vmatprep.subr.bf16.mxu0 %v760_v28 }
  0x74   :  { %578 = vmatpush3.bf16.msra.mxu0 %v631_v51 }
  0x75   :  { %579 = vmatprep.subr.bf16.mxu0 %v760_v28 }
  0x78   :  { %580 = vmatpush3.bf16.msra.mxu0 %v632_v52 }
 0x12e   :  { %v181_v41 = vpop.f32.mrb[0].mxu0 }
 0x12f   :  { %v182_v42 = vadd.f32 %v181_v41, %v96_v39  ;;  %v183_v43 = vpop.f32.mrb[1].mxu0 }
 0x130   :  { %v184_v44 = vadd.f32 %v183_v43, %v100_v40  ;;  %v185_v45 = vpop.f32.mrb[2].mxu0 }
 0x131   :  { %v188_v46 = vmax.f32 %v182_v42, 0.0  ;;  %v186_v47 = vpop.f32.mrb[3].mxu0 }
 0x132   :  { %v189_v48 = vmax.f32 %v184_v44, 0.0 }
 0x133   :  { %v190_v50 = vpack.c.bf16 %v188_v46, %v188_v46 }
 0x134   :  { %v191_v49 = vpack.c.bf16 %v189_v48, %v189_v48 }
 0x136   :  { %359 = vmatprep.mubr.bf16.mxu1 %v191_v49 }
 0x137   :  { %360 = vmatmul.mubr.bf16.vlgmr.msra.gmra.mrb[0].mxu1 %v190_v50 }
 0x20a   :  { %v550_v53 = vpop.f32.mrb[0].mxu1 }
 0x20b   :  { %v551_v55 = vpop.f32.mrb[1].mxu1 }
 0x20c   :  { %v552_v56 = vadd.f32 %v551_v55, %v550_v53  ;;  %v553_v57 = vpop.f32.mrb[2].mxu1 }
 0x20d   :  { %v554_v58 = vpop.f32.mrb[3].mxu1 }
 0x20e   :  { %v362_v59 = vadd.f32 %v552_v56, %v508_v54 }
 0x210   :  { %v367_v60 = vmax.f32 %v362_v59, 0.0 }
 0x212   :  { %v368_v61 = vpack.c.bf16 %v367_v60, %v367_v60 }
 0x214   :  { %582 = vmatmul.mubr.bf16.vlgmr.msra.gmra.mrb[4].mxu0 %v368_v61 }
 0x2e7   :  { %v474_v63 = vpop.f32.mrb[4].mxu0 }
 0x2e8   :  { %v475_v0 = vadd.f32 %v525_v62, %v474_v63  ;;  %v583_v1 = vpop.f32.mrb[5].mxu0 }
 0x2e9   :  { %v477_v2 = vpop.f32.mrb[6].mxu0 }
 0x2ea   :  { %v480_v3 = vpack.c.bf16 %v475_v0, %v475_v0  ;;  %v584_v4 = vpop.f32.mrb[7].mxu0 }
 0x2ec   :  { %481 = vst [vmem:[#allocation10] sm:$0xf] %v480_v3 }
 0x2ed   :  { %732 = shalt.err (!%p729_p8)
}
 0x2ee   :  { %s733_s6 = scalar_lea.hbm %s879_s7, 64 }
 0x2ef   :  { %p734_p9 = scmp.ne.s32.totalorder %s879_s7, %s733_s6  ;;  %p737_p10 = scmp.lt.u32.totalorder %s733_s6, %s879_s7 }
 0x2f1   :  { %p739_p11 = pnand %p737_p10, %p734_p9 }
 0x2f3   :  { %742 = shalt.err (!%p739_p11)
}
 0x2f4   :  { %491 = dma.vmem_to_hbm [thread:$0]  %s489_s8, 64, %s879_s7, [#allocation4]  }
 0x2f5   :  { %749 = dma.done.wait [#allocation4], 64  }
 0x2f6   :  { %750 = vsyncadd [#allocation4], 4294967232 }
 0x2f7   :  { %495 = vsyncpa [#allocation3], 1 }
 0x2f8   :  { %496 = vsyncpa [#allocation6], 1 }
 0x2f9   :  { %497 = vsyncpa [#allocation9], 1 }
 0x2fa   :  { %498 = vsyncpa [#allocation4], 1 }

</bundles_post_ra>
